<compile_context>
chip_gen: v5e
topology: v5e:2x2
jax: 0.10.0
libtpu: 0.0.40
codegen_flags: <defaults>
</compile_context>

<pallas_src>
import jax
import jax.numpy as jnp
from jax.experimental import pallas as pl
from jax.experimental.pallas import tpu as pltpu


# --------------------------------------------------------------------------- kernels
def _make_fused_kernel(inv_L):
    def kernel(x_ref, w1_ref, w2_ref, o_ref):
        # x_ref: (BB, C, Lp), w1_ref: (C, H), w2_ref: (H, C), o_ref: (BB, C, Lp)
        x = x_ref[...]                                            # native dtype

        # Squeeze: widening-accumulate sum over L, scaled by the true 1/L (pad is zero).
        y = jnp.sum(x, axis=-1, dtype=jnp.float32) * inv_L        # (BB, C) f32

        # Excitation: Linear(C->H, no bias) -> ReLU -> Linear(H->C) -> Sigmoid.
        h = jnp.dot(y.astype(w1_ref.dtype), w1_ref[...],
                    preferred_element_type=jnp.float32)           # (BB, H)
        h = jnp.maximum(h, 0.0)
        s = jnp.dot(h.astype(w2_ref.dtype), w2_ref[...],
                    preferred_element_type=jnp.float32)           # (BB, C)
        s = jax.nn.sigmoid(s)

        # Scale: broadcast (BB, C, 1) over L, multiply in the input dtype.
        o_ref[...] = (x * s[:, :, None].astype(x.dtype)).astype(o_ref.dtype)

    return kernel


def _make_squeeze_excite_kernel(inv_L):
    # Fallback pass 1: accumulate the per-(b, c) sum across L chunks, run the
    # excitation on the last chunk, and emit the gate s of shape (1, C, 1).
    def kernel(x_ref, w1_ref, w2_ref, s_ref, acc_ref):
        li = pl.program_id(1)

        @pl.when(li == 0)
        def _():
            acc_ref[...] = jnp.zeros_like(acc_ref)

        acc_ref[...] += jnp.sum(x_ref[...], axis=-1, dtype=jnp.float32)   # (1, C)

        @pl.when(li == pl.num_programs(1) - 1)
        def _():
            y = acc_ref[...] * inv_L
            h = jnp.maximum(jnp.dot(y.astype(w1_ref.dtype), w1_ref[...],
                                    preferred_element_type=jnp.float32), 0.0)
            s = jax.nn.sigmoid(jnp.dot(h.astype(w2_ref.dtype), w2_ref[...],
                                       preferred_element_type=jnp.float32))
            s_ref[...] = s[:, :, None]

    return kernel


def _scale_kernel(x_ref, s_ref, o_ref):
    # Fallback pass 2: x chunk (1, C, LT) * gate (1, C, 1).
    x = x_ref[...]
    o_ref[...] = (x * s_ref[...].astype(x.dtype)).astype(o_ref.dtype)


# --------------------------------------------------------------------------- sizing
def _vmem_capacity_bytes():
    """Physical per-core VMEM; conservative (v7x) default if the query is unavailable."""
    try:
        info = pltpu.get_tpu_info()
        for name in ("vmem_capacity_bytes", "vmem_size_bytes", "vmem_bytes"):
            cap = getattr(info, name, None)
            if cap:
                return int(cap)
    except Exception:
        pass
    return 64 << 20


# --------------------------------------------------------------------------- wrapper
def se_block(x, w1, w2):
    """x: (B, C, L); w1: (C, H); w2: (H, C). Returns (B, C, L)."""
    B, C, L = x.shape
    H = w1.shape[1]
    assert w1.shape == (C, H) and w2.shape == (H, C)

    itemsize = jnp.dtype(x.dtype).itemsize
    w_bytes = (C * H + H * C) * jnp.dtype(w1.dtype).itemsize

    # Pad L to a lane-dense multiple of 128 so output stores are unmasked.
    L_pad = max(128, ((L + 127) // 128) * 128)
    if L_pad != L:
        x = jnp.pad(x, ((0, 0), (0, 0), (0, L_pad - L)))
    inv_L = 1.0 / float(L)   # mean uses the true length; the zero pad adds nothing

    cap = _vmem_capacity_bytes()
    budget = int(cap * 0.70)     # tile-choice budget (~45 MiB v7x, ~90 MiB v5e/v6e)
    hard_cap = int(cap * 0.80)   # scoped vmem ceiling  (~51 MiB v7x, ~102 MiB v5e/v6e)

    def fused_bytes(bb):
        block = bb * C * L_pad * itemsize
        f32_tmp = bb * C * L_pad * 4 if itemsize < 4 else 0   # widened-squeeze temp
        return 4 * block + f32_tmp + 4 * w_bytes + (2 << 20)  # in+out double-buffered

    candidates = [bb for bb in range(1, B + 1)
                  if B % bb == 0 and fused_bytes(bb) <= budget]

    if candidates:
        # ---------------- single-pass fused path ----------------
        def score(bb):
            steps = B // bb
            block = bb * C * L_pad * itemsize
            big = block >= (4 << 20)
            if 4 <= steps <= 16 and steps % 2 == 0 and big:
                tier = 5   # amortized fill/drain + even split across v7x's two TCs
            elif steps >= 2 and steps % 2 == 0 and big:
                tier = 4
            elif steps >= 2 and big:
                tier = 3
            elif steps >= 2:
                tier = 2
            else:
                tier = 1
            return (tier, block)

        BB = max(candidates, key=score)
        grid = (B // BB,)
        vmem_limit = int(min(max(fused_bytes(BB), 32 << 20), hard_cap))

        cost = pl.CostEstimate(
            flops=4 * B * C * H + 2 * B * C * L_pad,
            transcendentals=B * C,
            bytes_accessed=2 * B * C * L_pad * itemsize + 2 * w_bytes,
        )

        out = pl.pallas_call(
            _make_fused_kernel(inv_L),
            out_shape=jax.ShapeDtypeStruct((B, C, L_pad), x.dtype),
            grid_spec=pltpu.PrefetchScalarGridSpec(
                num_scalar_prefetch=0,
                grid=grid,
                in_specs=[
                    pl.BlockSpec((BB, C, L_pad), lambda b: (b, 0, 0)),
                    pl.BlockSpec((C, H), lambda b: (0, 0)),
                    pl.BlockSpec((H, C), lambda b: (0, 0)),
                ],
                out_specs=pl.BlockSpec((BB, C, L_pad), lambda b: (b, 0, 0)),
            ),
            compiler_params=pltpu.CompilerParams(
                dimension_semantics=("parallel",),
                vmem_limit_bytes=vmem_limit,
            ),
            cost_estimate=cost,
        )(x, w1, w2)
    else:
        # ---------------- fallback: one (1, C, L) slab is too big -> chunk over L ----------------
        def chunk_bytes(lt):
            block = C * lt * itemsize
            f32_tmp = C * lt * 4 if itemsize < 4 else 0
            return 4 * block + f32_tmp + 4 * w_bytes + 4 * C + (2 << 20)

        LT = 128
        for lt in range(L_pad, 127, -128):
            if L_pad % lt == 0 and chunk_bytes(lt) <= budget:
                LT = lt
                break
        n_l = L_pad // LT
        vmem_limit = int(min(max(chunk_bytes(LT), 32 << 20), hard_cap))

        # Pass 1: squeeze (accumulate over L chunks) + excitation -> gate (B, C, 1).
        s = pl.pallas_call(
            _make_squeeze_excite_kernel(inv_L),
            out_shape=jax.ShapeDtypeStruct((B, C, 1), jnp.float32),
            grid_spec=pltpu.PrefetchScalarGridSpec(
                num_scalar_prefetch=0,
                grid=(B, n_l),
                in_specs=[
                    pl.BlockSpec((1, C, LT), lambda b, l: (b, 0, l)),
                    pl.BlockSpec((C, H), lambda b, l: (0, 0)),
                    pl.BlockSpec((H, C), lambda b, l: (0, 0)),
                ],
                out_specs=pl.BlockSpec((1, C, 1), lambda b, l: (b, 0, 0)),
                scratch_shapes=[pltpu.VMEM((1, C), jnp.float32)],
            ),
            compiler_params=pltpu.CompilerParams(
                dimension_semantics=("parallel", "arbitrary"),
                vmem_limit_bytes=vmem_limit,
            ),
        )(x, w1, w2)

        # Pass 2: scale every L chunk by the per-(batch, channel) gate.
        out = pl.pallas_call(
            _scale_kernel,
            out_shape=jax.ShapeDtypeStruct((B, C, L_pad), x.dtype),
            grid_spec=pltpu.PrefetchScalarGridSpec(
                num_scalar_prefetch=0,
                grid=(B, n_l),
                in_specs=[
                    pl.BlockSpec((1, C, LT), lambda b, l: (b, 0, l)),
                    pl.BlockSpec((1, C, 1), lambda b, l: (b, 0, 0)),
                ],
                out_specs=pl.BlockSpec((1, C, LT), lambda b, l: (b, 0, l)),
            ),
            compiler_params=pltpu.CompilerParams(
                dimension_semantics=("parallel", "parallel"),
                vmem_limit_bytes=vmem_limit,
            ),
            cost_estimate=pl.CostEstimate(
                flops=B * C * L_pad,
                transcendentals=0,
                bytes_accessed=2 * B * C * L_pad * itemsize,
            ),
        )(x, s)

    if L_pad != L:
        out = out[:, :, :L]
    return out


def se_block_ref(x, w1, w2):
    """Pure-JAX reference matching the PyTorch forward."""
    y = jnp.mean(x.astype(jnp.float32), axis=-1)      # (B, C)
    h = jnp.maximum(y @ w1.astype(jnp.float32), 0.0)  # (B, H)
    s = jax.nn.sigmoid(h @ w2.astype(jnp.float32))    # (B, C)
    return (x * s[:, :, None].astype(x.dtype)).astype(x.dtype)


if __name__ == "__main__":
    # Small shapes consistent with the module: ch_in=64, reduction=16 -> hidden=4.
    B, C, L = 4, 64, 128
    reduction = 16
    H = C // reduction

    key = jax.random.PRNGKey(0)
    kx, k1, k2 = jax.random.split(key, 3)
    x = jax.random.normal(kx, (B, C, L), dtype=jnp.float32)
    # Linear(C->H) and Linear(H->C) weights, no bias (stored pre-transposed).
    w1 = jax.random.normal(k1, (C, H), dtype=jnp.float32) * (1.0 / jnp.sqrt(C))
    w2 = jax.random.normal(k2, (H, C), dtype=jnp.float32) * (1.0 / jnp.sqrt(H))

    out = se_block(x, w1, w2)
    out = jax.block_until_ready(out)

    ref = se_block_ref(x, w1, w2)
    assert out.shape == (B, C, L)
    assert jnp.allclose(out, ref, atol=1e-5, rtol=1e-5), "mismatch vs reference"

    print("KERNEL_OK")
</pallas_src>

<mosaic_0001>
module attributes {stable_mosaic.version = 11 : i64} {
  func.func @kernel(%arg0: i32, %arg1: memref<2x64x128xf32, #tpu.memory_space<vmem>>, %arg2: memref<64x4xf32, #tpu.memory_space<vmem>>, %arg3: memref<4x64xf32, #tpu.memory_space<vmem>>, %arg4: memref<2x64x128xf32, #tpu.memory_space<vmem>>) attributes {dimension_semantics = [#tpu.dimension_semantics<parallel>], iteration_bounds = array<i64: 2>, scalar_prefetch = 0 : i64, scratch_operands = 0 : i64, tpu.core_type = #tpu.core_type<tc>, window_params = [{transform_indices = @transform_0, window_bounds = array<i64: 2, 64, 128>}, {pipeline_mode = #tpu.pipeline_mode<synchronous>, transform_indices = @transform_1, window_bounds = array<i64: 64, 4>}, {pipeline_mode = #tpu.pipeline_mode<synchronous>, transform_indices = @transform_2, window_bounds = array<i64: 4, 64>}, {transform_indices = @transform_3, window_bounds = array<i64: 2, 64, 128>}]} {
    %c0 = arith.constant 0 : index
    %c0_0 = arith.constant 0 : index
    %c0_1 = arith.constant 0 : index
    %0 = vector.load %arg1[%c0, %c0_0, %c0_1] : memref<2x64x128xf32, #tpu.memory_space<vmem>>, vector<2x64x128xf32>
    %cst = arith.constant dense<0.000000e+00> : vector<2x64xf32>
    %1 = vector.multi_reduction <add>, %0, %cst [2] : vector<2x64x128xf32> to vector<2x64xf32>
    %cst_2 = arith.constant 7.812500e-03 : f32
    %2 = vector.broadcast %cst_2 : f32 to vector<2x64xf32>
    %3 = arith.mulf %1, %2 : vector<2x64xf32>
    %c0_3 = arith.constant 0 : index
    %c0_4 = arith.constant 0 : index
    %4 = vector.load %arg2[%c0_3, %c0_4] : memref<64x4xf32, #tpu.memory_space<vmem>>, vector<64x4xf32>
    %cst_5 = arith.constant dense<0.000000e+00> : vector<2x4xf32>
    %5 = tpu.matmul %3, %4, %cst_5 {dimension_numbers = #tpu.dot_dimension_numbers<[1], [0], [0], [1], [0, 0, 1, 1], [], []>} : vector<2x64xf32>, vector<64x4xf32>, vector<2x4xf32> -> vector<2x4xf32>
    %cst_6 = arith.constant 0.000000e+00 : f32
    %6 = vector.broadcast %cst_6 : f32 to vector<2x4xf32>
    %7 = arith.maximumf %5, %6 : vector<2x4xf32>
    %c0_7 = arith.constant 0 : index
    %c0_8 = arith.constant 0 : index
    %8 = vector.load %arg3[%c0_7, %c0_8] : memref<4x64xf32, #tpu.memory_space<vmem>>, vector<4x64xf32>
    %cst_9 = arith.constant dense<0.000000e+00> : vector<2x64xf32>
    %9 = tpu.matmul %7, %8, %cst_9 {dimension_numbers = #tpu.dot_dimension_numbers<[1], [0], [0], [1], [0, 0, 1, 1], [], []>} : vector<2x4xf32>, vector<4x64xf32>, vector<2x64xf32> -> vector<2x64xf32>
    %10 = arith.negf %9 : vector<2x64xf32>
    %11 = math.exp %10 : vector<2x64xf32>
    %cst_10 = arith.constant 1.000000e+00 : f32
    %12 = vector.broadcast %cst_10 : f32 to vector<2x64xf32>
    %13 = arith.addf %12, %11 : vector<2x64xf32>
    %14 = arith.divf %12, %13 : vector<2x64xf32>
    %15 = vector.shape_cast %14 : vector<2x64xf32> to vector<2x64x1xf32>
    %16 = vector.broadcast %15 : vector<2x64x1xf32> to vector<2x64x128xf32>
    %17 = arith.mulf %0, %16 : vector<2x64x128xf32>
    %c0_11 = arith.constant 0 : index
    %c0_12 = arith.constant 0 : index
    %c0_13 = arith.constant 0 : index
    %18 = vector.load %arg4[%c0_11, %c0_12, %c0_13] : memref<2x64x128xf32, #tpu.memory_space<vmem>>, vector<2x64x128xf32>
    tpu.vector_store %arg4[%c0_11, %c0_12, %c0_13], %17 {strides = array<i32>} : memref<2x64x128xf32, #tpu.memory_space<vmem>>, vector<2x64x128xf32>,
    return
  }
  func.func @transform_0(%arg0: i32) -> (i32, i32, i32) {
    %c0_i32 = arith.constant 0 : i32
    %c0_i32_0 = arith.constant 0 : i32
    %c0_i32_1 = arith.constant 0 : i32
    return %arg0, %c0_i32, %c0_i32_0 : i32, i32, i32
  }
  func.func @transform_1(%arg0: i32) -> (i32, i32) {
    %c0_i32 = arith.constant 0 : i32
    %c0_i32_0 = arith.constant 0 : i32
    %c0_i32_1 = arith.constant 0 : i32
    return %c0_i32, %c0_i32_0 : i32, i32
  }
  func.func @transform_2(%arg0: i32) -> (i32, i32) {
    %c0_i32 = arith.constant 0 : i32
    %c0_i32_0 = arith.constant 0 : i32
    %c0_i32_1 = arith.constant 0 : i32
    return %c0_i32, %c0_i32_0 : i32, i32
  }
  func.func @transform_3(%arg0: i32) -> (i32, i32, i32) {
    %c0_i32 = arith.constant 0 : i32
    %c0_i32_0 = arith.constant 0 : i32
    %c0_i32_1 = arith.constant 0 : i32
    return %arg0, %c0_i32, %c0_i32_0 : i32, i32, i32
  }
}

</mosaic_0001>

<bundles_post_ra>
// kernel: tpu_custom_call.1
= control target key start
LH: loop header
LB: loop body
LE: loop exit
PB: predicated region body
PF: predicated region fallthrough
CT: control target
= control target key end

     0   :  { %8 = vsyncpa [#allocation3], 0  ;;  %s1108_s0 = inlined_call_operand.hbm [shape: f32[4,64,128], index: 0, kind: input, shape index: {}]   ;;  %s1109_s1 = inlined_call_operand.vmem [shape: f32[64,4], index: 1, kind: input, shape index: {}]   ;;  %s1110_s2 = inlined_call_operand.vmem [shape: f32[4,64], index: 2, kind: input, shape index: {}]   ;;  %s1111_s3 = inlined_call_operand.hbm [shape: f32[4,64,128], index: 3, kind: output, shape index: {}]  }
   0x1   :  { %10 = vsyncpa [#allocation3 + $0x1], 0 }
   0x2   :  { %11 = vsyncpa [#allocation4], 0 }
   0x3   :  { %13 = vsyncpa [#allocation4 + $0x1], 0  ;;  %s839_s12 = smov 0   ;;  %s841_s13 = smov 0  }
   0x4   :  { %s843_s14 = smov 0   ;;  %s845_s15 = smov 0  }
   0x5 LB: > { %s860_s16 = sadd.s32 4294967295, %s813_s15   ;;  %s622_s17 = sadd.s32 4294967294, %s813_s15   ;;  %s813_s15 = sphi %s845_s15, %s1121_s15   ;;  %s809_s14 = sphi %s843_s14, %s1120_s14   ;;  %s805_s13 = sphi %s841_s13, %s1119_s13   ;;  %s801_s12 = sphi %s839_s12, %s1118_s12  }
   0x6   : > { %s864_s18 = sadd.s32 1, %s813_s15   ;;  %s26_s19 = sadd.s32 1, %s809_s14 }
   0x7   : > { %s23_s20 = ssub.s32 %s813_s15, %s864_s18  ;;  %p33_p0 = scmp.ne.s32.totalorder %s809_s14, %s805_s13 }
   0x8   : > { %p24_p1 = scmp.eq.s32.totalorder %s23_s20, 0  ;;  %p34_p2 = scmp.eq.s32.totalorder %s813_s15, 0 }
   0x9   : > { %p39_p3 = scmp.ne.s32.totalorder %s805_s13, %s801_s12  ;;  %p40_p4 = scmp.eq.s32.totalorder %s860_s16, 0 }
   0xa   : > { %s876_s21 = scalar_select %p24_p1, %s809_s14, %s26_s19  }
   0xb   : > { %p878_p5 = por %p34_p2, %p33_p0  ;;  %p882_p6 = por %p40_p4, %p39_p3 }
   0xc   : > { %p105_p7 = scmp.eq.s32.totalorder %s860_s16, 1  ;;  %p111_p8 = scmp.eq.s32.totalorder %s622_s17, 1 }
   0xd   : > { %p658_p10 = scmp.lt.s32.totalorder %s813_s15, 2  ;;  %s137_s26 = sand.u32 1, %s809_s14  }
   0xe   : > { %p889_p11 = por %p105_p7, %p33_p0  ;;  %p893_p12 = por %p111_p8, %p39_p3 }
   0xf   : > { %s643_s27 = sshll.u32 %s813_s15, 7  ;;  %s625_s28 = sshll.u32 %s137_s26, 7 }
  0x10   : > { %s147_s4 = scalar_lea.hbm %s1108_s0, %s643_s27  ;;  %s141_s6 = scalar_lea.vmem [#allocation2], %s625_s28 }
  0x11   : > { %s148_s5 = sshll.u32 %s147_s4, 4  ;;  %s150_s7 = sshll.u32 %s141_s6, 4  ;;  %s149_s5 = int_to_ptr.hbm [resolvable:$true] %s148_s5  ;;  %s151_s7 = int_to_ptr.vmem [resolvable:$true] %s150_s7 }
  0x12   : > { %p904_p13 = pnand %p658_p10, %p878_p5  ;;  %p629_p0 = scmp.ge.s32.totalorder %s813_s15, 1 }
  0x13   : > { %p158_p1 = scmp.lt.s32.totalorder %s813_s15, 3  ;;  %s138_s9 = scalar_lea.sflag [#allocation3], %s137_s26 }
  0x14   : > { %s717_s10 = sshra.s32 %s149_s5, 4  ;;  %p721_p3 = pneg %p904_p13  ;;  %s718_s10 = int_to_ptr.hbm [resolvable:$true] %s717_s10 }
  0x15   : > { %s719_s11 = scalar_lea.hbm %s718_s10, 128  ;;  %s724_s20 = scalar_lea.hbm %s1108_s0, 256 }
  0x16   : > { %p720_p2 = scmp.ne.s32.totalorder %s718_s10, %s719_s11  ;;  %p725_p5 = scmp.lt.s32.totalorder %s718_s10, %s1108_s0 }
  0x17   : > { %p726_p8 = scmp.lt.s32.totalorder %s724_s20, %s719_s11 }
  0x18   : > { %p722_p4 = pnand %p721_p3, %p720_p2 }
  0x19   : > { %p727_p10 = por %p726_p8, %p725_p5 }
  0x1a   : > { %p723_p7 = pneg %p722_p4 }
  0x1c   : > { %p728_p9 = pnand %p727_p10, %p723_p7 }
  0x1e   : > { %731 = shalt.err (!%p728_p9)
}
  0x1f   : > { %s815_s26 = smov 128   ;;  %s816_s28 = smov 8  }
  0x20   : > { %653 = dma.hbm_to_vmem [thread:$0]  (!%p904_p13), %s149_s5, 2048, %s151_s7, %s138_s9, %s815_s26, %s815_s26, %s816_s28  }
  0x21   : > { %p159_p2 = pnand %p629_p0, %p158_p1 }
  0x22   : > { %s925_s29 = sand.u32 (!%p159_p2), 1, %s805_s13  }
  0x23   : > { %162 = sbr.rel (%p159_p2) target bundleno = 691 (0x2b3), region = 32  ;;  %s630_s30 = sshll.u32 (!%p159_p2), %s925_s29, 7 }
  0x24   : > { %s165_s4 = scalar_lea.sflag (!%p159_p2), [#allocation3], %s925_s29  ;;  %s931_s6 = scalar_lea.vmem (!%p159_p2), [#allocation2], %s630_s30 }
  0x28   : > { %792 = dma.done.wait (%p882_p6), %s165_s4, 2048  }
  0x29   : > { %794 = vsyncadd (%p882_p6), %s165_s4, 4294965248  ;;  %v938_v0 = vld [vmem:[%s931_s6 + $0x40] sm:$0xff]  ;;  %v944_v2 = vld [vmem:[%s931_s6 + $0x10] sm:$0xff]  ;;  %v282_v33 = vlaneseq  ;;  %vm287_vm0 = vcmask 130112   ;;  %vm291_vm1 = vcmask 195712   ;;  %vm295_vm2 = vcmask 261312  }
  0x2a   : > { %v941_v1 = vld [vmem:[%s931_s6] sm:$0xff]  ;;  %226 = vadd.xlane.f32.xlu1 %v938_v0  ;;  %214 = vadd.xlane.f32.xlu2 %v944_v2  ;;  %v950_v3 = vld [vmem:[%s931_s6 + $0x48] sm:$0xff]  ;;  %v956_v5 = vld [vmem:[%s931_s6 + $0x50] sm:$0xff]  ;;  %vm299_vm3 = vcmask 326912   ;;  %vm303_vm4 = vcmask 392512   ;;  %vm307_vm5 = vcmask 458112  }
  0x2b   : > { %210 = vadd.xlane.f32.xlu0 %v941_v1  ;;  %v953_v4 = vld [vmem:[%s931_s6 + $0x8] sm:$0xff]  ;;  %v962_v6 = vld [vmem:[%s931_s6 + $0x58] sm:$0xff]  ;;  %v968_v8 = vld [vmem:[%s931_s6 + $0x20] sm:$0xff]  ;;  %v283_v34 = vand.u32 127, %v282_v33  ;;  %vm311_vm6 = vcmask 523712   ;;  %vm328_vm7 = vcmask 1041409  }
  0x2c   : > { %v965_v7 = vld [vmem:[%s931_s6 + $0x18] sm:$0xff]  ;;  %v974_v9 = vld [vmem:[%s931_s6 + $0x28] sm:$0xff]  ;;  %v977_v10 = vld [vmem:[%s931_s6 + $0x60] sm:$0xff]  ;;  %vm330_vm8 = vcmask 523264   ;;  %vm359_vm9 = vcmask 1043456   ;;  %vm355_vm10 = vcmask 31744  }
  0x2d   : > { %v980_v11 = vld [vmem:[%s931_s6 + $0x68] sm:$0xff]  ;;  %v986_v12 = vld [vmem:[%s931_s6 + $0x70] sm:$0xff]  ;;  %v992_v14 = vld [vmem:[%s931_s6 + $0x38] sm:$0xff]  ;;  %v285_v37 = vadd.s32 4294967288, %v283_v34  ;;  %v289_v43 = vadd.s32 4294967280, %v283_v34  ;;  %v293_v46 = vadd.s32 4294967272, %v283_v34 }
  0x2e   : > { %v989_v13 = vld [vmem:[%s931_s6 + $0x30] sm:$0xff]  ;;  %v998_v15 = vld [vmem:[%s931_s6 + $0x78] sm:$0xff]  ;;  %v263_v21 = vld [vmem:[%s1109_s1 + $0x28] sm:$0xff]  ;;  %v297_v54 = vadd.s32 4294967264, %v283_v34  ;;  %v301_v60 = vadd.s32 4294967256, %v283_v34  ;;  %s1041_s7 = scalar_lea.vmem [#allocation5], %s630_s30 }
  0x2f   : > { %v265_v16 = vld [vmem:[%s1109_s1 + $0x38] sm:$0xff]  ;;  %v264_v20 = vld [vmem:[%s1109_s1 + $0x30] sm:$0xff]  ;;  %v262_v22 = vld [vmem:[%s1109_s1 + $0x20] sm:$0xff]  ;;  %s645_s30 = sshll.u32 %s860_s16, 7  ;;  %s546_s11 = sshll.u32 %s1041_s7, 4  ;;  %s547_s11 = int_to_ptr.vmem [resolvable:$true] %s546_s11 }
  0x30   : > { %341 = vmatpush.msra.mxu0 %v265_v16  ;;  %v261_v23 = vld [vmem:[%s1109_s1 + $0x18] sm:$0xff]  ;;  %v260_v27 = vld [vmem:[%s1109_s1 + $0x10] sm:$0xff]  ;;  %v259_v28 = vld [vmem:[%s1109_s1 + $0x8] sm:$0xff]  ;;  %v305_v16 = vadd.s32 4294967248, %v283_v34  ;;  %s545_s10 = scalar_lea.hbm %s1111_s3, %s645_s30  ;;  %s533_s19 = scalar_lea.sflag [#allocation4], %s925_s29 }
  0x31   : > { %v258_v29 = vld [vmem:[%s1109_s1] sm:$0xff]  ;;  %s548_s17 = sshll.u32 %s545_s10, 4  ;;  %s767_s26 = scalar_lea.hbm %s1111_s3, 256  ;;  %s549_s17 = int_to_ptr.hbm [resolvable:$true] %s548_s17 }
  0x32   : > { %228 = vadd.xlane.f32.xlu1 %v950_v3  ;;  %230 = vadd.xlane.f32.xlu2 %v956_v5  ;;  %s761_s20 = sshra.s32 %s549_s17, 4  ;;  %s762_s20 = int_to_ptr.hbm [resolvable:$true] %s761_s20 }
  0x33   : > { %212 = vadd.xlane.f32.xlu0 %v953_v4  ;;  %342 = vmatpush.msra.mxu0 %v264_v20  ;;  %s763_s16 = scalar_lea.hbm %s762_s20, 128  ;;  %p768_p0 = scmp.lt.s32.totalorder %s762_s20, %s1111_s3 }
  0x34   : > { %p764_p6 = scmp.ne.s32.totalorder %s762_s20, %s763_s16  ;;  %p769_p1 = scmp.lt.s32.totalorder %s767_s26, %s763_s16 }
  0x35   : > { %343 = vmatpush.msra.mxu0 %v263_v21 }
  0x36   : > { %p765_p9 = pnand %p764_p6, %p889_p11  ;;  %p770_p3 = por %p769_p1, %p768_p0 }
  0x37   : > { %344 = vmatpush.msra.mxu0 %v262_v22 }
  0x38   : > { %p766_p13 = pneg %p765_p9 }
  0x39   : > { %345 = vmatpush.msra.mxu0 %v261_v23 }
  0x3a   : > { %232 = vadd.xlane.f32.xlu1 %v962_v6  ;;  %218 = vadd.xlane.f32.xlu2 %v968_v8  ;;  %p771_p4 = pnand %p770_p3, %p766_p13 }
  0x3b   : > { %216 = vadd.xlane.f32.xlu0 %v965_v7  ;;  %346 = vmatpush.msra.mxu0 %v260_v27 }
  0x3d   : > { %347 = vmatpush.msra.mxu0 %v259_v28  ;;  %v309_v28 = vadd.s32 4294967240, %v283_v34 }
  0x3f   : > { %348 = vmatpush.msra.mxu0 %v258_v29 }
  0x42   : > { %220 = vadd.xlane.f32.xlu1 %v974_v9  ;;  %236 = vadd.xlane.f32.xlu2 %v980_v11 }
  0x43   : > { %234 = vadd.xlane.f32.xlu0 %v977_v10 }
  0x4a   : > { %238 = vadd.xlane.f32.xlu1 %v986_v12  ;;  %224 = vadd.xlane.f32.xlu2 %v992_v14 }
  0x4b   : > { %222 = vadd.xlane.f32.xlu0 %v989_v13 }
  0x53   : > { %240 = vadd.xlane.f32.xlu0 %v998_v15 }
  0x9d   : > { %v227_v17 = vpop.xlane.xlu1 %226  ;;  %v215_v19 = vpop.xlane.xlu2 %214 }
  0x9e   : > { %v211_v18 = vpop.xlane.xlu0 %210  ;;  %v250_v40 = vmul.f32 0.0078125, %v227_v17  ;;  %v244_v44 = vmul.f32 0.0078125, %v215_v19 }
  0x9f   : > { %v242_v41 = vmul.f32 0.0078125, %v211_v18 }
  0xa0   : > { %v313_v49 = vperm.slane %v250_v40, %v283_v34  ;;  %v290_v53 = vperm.slane %v244_v44, %v289_v43 }
  0xa1   : > { %v284_v50 = vperm.slane %v242_v41, %v283_v34 }
  0xa5   : > { %v229_v24 = vpop.xlane.xlu1 %228  ;;  %v231_v26 = vpop.xlane.xlu2 %230 }
  0xa6   : > { %v213_v25 = vpop.xlane.xlu0 %212  ;;  %v251_v42 = vmul.f32 0.0078125, %v229_v24  ;;  %v252_v48 = vmul.f32 0.0078125, %v231_v26 }
  0xa7   : > { %v243_v38 = vmul.f32 0.0078125, %v213_v25 }
  0xa8   : > { %v314_v51 = vperm.slane %v251_v42, %v285_v37  ;;  %v316_v63 = vperm.slane %v252_v48, %v289_v43 }
  0xa9   : > { %v286_v45 = vperm.slane %v243_v38, %v285_v37 }
  0xaa   : > { %v315_v19 = vsel %vm287_vm0, %v314_v51, %v313_v49  ;;  %v354_v49 = vld [vmem:[%s1110_s2] sm:$0xf] }
  0xab   : > { %v288_v58 = vsel %vm287_vm0, %v286_v45, %v284_v50  ;;  %633 = vmatpush.msk.msra.mxu1 %vm359_vm9, %v354_v49 }
  0xac   : > { %v292_v22 = vsel %vm291_vm1, %v290_v53, %v288_v58 }
  0xad   : > { %v233_v30 = vpop.xlane.xlu1 %232  ;;  %v219_v32 = vpop.xlane.xlu2 %218 }
  0xae   : > { %v217_v31 = vpop.xlane.xlu0 %216  ;;  %v253_v52 = vmul.f32 0.0078125, %v233_v30  ;;  %v246_v55 = vmul.f32 0.0078125, %v219_v32  ;;  %v317_v30 = vsel %vm291_vm1, %v316_v63, %v315_v19 }
  0xaf   : > { %v245_v47 = vmul.f32 0.0078125, %v217_v31 }
  0xb0   : > { %v318_v20 = vperm.slane %v253_v52, %v293_v46  ;;  %v298_v23 = vperm.slane %v246_v55, %v297_v54  ;;  %v404_v52 = vshrl.u32 %v282_v33, 7 }
  0xb1   : > { %v294_v59 = vperm.slane %v245_v47, %v293_v46 }
  0xb2   : > { %v319_v32 = vsel %vm295_vm2, %v318_v20, %v317_v30  ;;  %696 = vset.pattern.permute.xlu1 %v404_v52  ;;  %v417_v53 = vadd.s32 16, %v404_v52 }
  0xb3   : > { %v296_v26 = vsel %vm295_vm2, %v294_v59, %v292_v22  ;;  %v429_v22 = vadd.s32 32, %v404_v52 }
  0xb4   : > { %698 = vset.pattern.permute.xlu0 %v417_v53 }
  0xb5   : > { %v221_v35 = vpop.xlane.xlu1 %220  ;;  %v237_v39 = vpop.xlane.xlu2 %236 }
  0xb6   : > { %v235_v36 = vpop.xlane.xlu0 %234  ;;  %v247_v61 = vmul.f32 0.0078125, %v221_v35  ;;  %v255_v21 = vmul.f32 0.0078125, %v237_v39 }
  0xb7   : > { %v254_v56 = vmul.f32 0.0078125, %v235_v36  ;;  %v300_v36 = vsel %vm299_vm3, %v298_v23, %v296_v26  ;;  %v447_v26 = vadd.s32 56, %v404_v52 }
  0xb8   : > { %v302_v27 = vperm.slane %v247_v61, %v301_v60  ;;  %v322_v35 = vperm.slane %v255_v21, %v301_v60  ;;  %v423_v21 = vadd.s32 24, %v404_v52 }
  0xb9   : > { %v320_v24 = vperm.slane %v254_v56, %v297_v54  ;;  %v411_v54 = vadd.s32 8, %v404_v52 }
  0xba   : > { %v304_v40 = vsel %vm303_vm4, %v302_v27, %v300_v36 }
  0xbb   : > { %v321_v37 = vsel %vm299_vm3, %v320_v24, %v319_v32  ;;  %697 = vset.pattern.permute.xlu2 %v411_v54  ;;  %v441_v24 = vadd.s32 48, %v404_v52 }
  0xbc   : > { %v323_v34 = vsel %vm303_vm4, %v322_v35, %v321_v37 }
  0xbd   : > { %v239_v62 = vpop.xlane.xlu1 %238  ;;  %v225_v18 = vpop.xlane.xlu2 %224 }
  0xbe   : > { %v223_v57 = vpop.xlane.xlu0 %222  ;;  %v256_v25 = vmul.f32 0.0078125, %v239_v62  ;;  %v249_v29 = vmul.f32 0.0078125, %v225_v18 }
  0xbf   : > { %v248_v17 = vmul.f32 0.0078125, %v223_v57 }
  0xc0   : > { %v324_v38 = vperm.slane %v256_v25, %v305_v16  ;;  %v310_v41 = vperm.slane %v249_v29, %v309_v28  ;;  %v435_v25 = vadd.s32 40, %v404_v52 }
  0xc1   : > { %v306_v31 = vperm.slane %v248_v17, %v305_v16 }
  0xc2   : > { %v325_v45 = vsel %vm307_vm5, %v324_v38, %v323_v34 }
  0xc3   : > { %v308_v43 = vsel %vm307_vm5, %v306_v31, %v304_v40 }
  0xc4   : > { %v312_v46 = vsel %vm311_vm6, %v310_v41, %v308_v43 }
  0xc6   : > { %v241_v39 = vpop.xlane.xlu0 %240 }
  0xc7   : > { %v257_v42 = vmul.f32 0.0078125, %v241_v39 }
  0xc9   : > { %v326_v44 = vperm.slane %v257_v42, %v309_v28 }
  0xcb   : > { %v327_v47 = vsel %vm311_vm6, %v326_v44, %v325_v45 }
  0xcc   : > { %v329_v48 = vsel %vm328_vm7, %v327_v47, %v312_v46 }
  0xcd   : > { %632 = vmatmul.msk.f32.vlgmr.msra.gmra.mxu0 %vm330_vm8, %v329_v48 }
 0x14a   : > { %v350_v50 = vpop.f32.mrf.mxu0 }
 0x14b   : > { %v353_v51 = vmax.f32 %v350_v50, 0.0 }
 0x14d   : > { %634 = vmatmul.msk.f32.vlgmr.msra.gmra.mxu1 %vm355_vm10, %v353_v51 }
 0x1ca   : > { %v380_v55 = vpop.f32.mrf.mxu1 }
 0x1cb   : > { %v635_v56 = vmul.f32 -1.442695, %v380_v55 }
 0x1cd   : > { %713 = vpow2.f32 %v635_v56 }
 0x1d3   : > { %v714_v57 = vpop.eup %713 }
 0x1d4   : > { %v386_v58 = vadd.f32 1.0, %v714_v57 }
 0x1d6   : > { %715 = vrcp.f32 %v386_v58  ;;  %v398_v62 = vand.u32 2147483648, %v386_v58  ;;  %v396_v16 = vand.u32 2147483647, %v386_v58  ;;  %vm392_vm12 = vweird.f32 %v386_v58 }
 0x1d8   : > { %v399_v33 = vor.u32 1.1754944e-38, %v398_v62  ;;  %vm397_vm14 = vcmp.eq.f32.partialorder %v396_v16, 8.507059e+37 }
 0x1dc   : > { %v716_v59 = vpop.eup %715 }
 0x1dd   : > { %v388_v60 = vmul.f32 %v716_v59, %v386_v58  ;;  %vm393_vm11 = vweird.f32 %v716_v59 }
 0x1de   : > { %vm394_vm13 = vmor %vm392_vm12, %vm393_vm11 }
 0x1df   : > { %v389_v61 = vsub.f32 1.0, %v388_v60 }
 0x1e1   : > { %v390_v63 = vmul.f32 %v716_v59, %v389_v61 }
 0x1e3   : > { %v391_v17 = vadd.f32 %v716_v59, %v390_v63 }
 0x1e5   : > { %v395_v18 = vsel %vm394_vm13, %v716_v59, %v391_v17 }
 0x1e6   : > { %v400_v19 = vsel %vm397_vm14, %v399_v33, %v395_v18 }
 0x1e7   : > { %v402_v20 = vperm.slane %v400_v19, 0  ;;  %v451_v23 = vperm.slane %v400_v19, 1 }
 0x1e9   : > { %419 = vperm.xlu0 %698, %v402_v20   ;;  %413 = vperm.xlu2 %697, %v402_v20  }
 0x1ea   : > { %407 = vperm.xlu1 %696, %v402_v20  }
 0x1f1   : > { %705 = vset.pattern.permute.xlu0 %v411_v54  ;;  %699 = vset.pattern.permute.xlu2 %v423_v21 }
 0x1f2   : > { %700 = vset.pattern.permute.xlu1 %v429_v22 }
 0x1f9   : > { %462 = vperm.xlu0 %705, %v451_v23   ;;  %425 = vperm.xlu2 %699, %v402_v20  }
 0x1fa   : > { %431 = vperm.xlu1 %700, %v402_v20  }
 0x201   : > { %710 = vset.pattern.permute.xlu0 %v441_v24  ;;  %701 = vset.pattern.permute.xlu2 %v435_v25 }
 0x202   : > { %702 = vset.pattern.permute.xlu1 %v441_v24 }
 0x209   : > { %492 = vperm.xlu0 %710, %v451_v23   ;;  %437 = vperm.xlu2 %701, %v402_v20  }
 0x20a   : > { %443 = vperm.xlu1 %702, %v402_v20  }
 0x211   : > { %703 = vset.pattern.permute.xlu2 %v447_v26  ;;  %712 = vset.pattern.permute.xlu0 %v447_v26 }
 0x212   : > { %704 = vset.pattern.permute.xlu1 %v404_v52 }
 0x219   : > { %449 = vperm.xlu2 %703, %v402_v20  }
 0x21a   : > { %456 = vperm.xlu1 %704, %v451_v23  }
 0x221   : > { %706 = vset.pattern.permute.xlu2 %v417_v53 }
 0x222   : > { %707 = vset.pattern.permute.xlu1 %v423_v21 }
 0x229   : > { %468 = vperm.xlu2 %706, %v451_v23  }
 0x22a   : > { %474 = vperm.xlu1 %707, %v451_v23  }
 0x231   : > { %708 = vset.pattern.permute.xlu2 %v429_v22 }
 0x232   : > { %709 = vset.pattern.permute.xlu1 %v435_v25 }
 0x239   : > { %480 = vperm.xlu2 %708, %v451_v23  }
 0x23a   : > { %486 = vperm.xlu1 %709, %v451_v23  }
 0x241   : > { %711 = vset.pattern.permute.xlu2 %v447_v26 }
 0x243   : > { %v414_v27 = vpop.permute.xlu2 %413 }
 0x244   : > { %v501_v28 = vmul.f32 %v414_v27, %v953_v4 }
 0x246   : > { %517 = vst [vmem:[%s1041_s7 + $0x8] sm:$0xff] %v501_v28 }
 0x249   : > { %498 = vperm.xlu2 %711, %v451_v23  }
 0x253   : > { %v426_v29 = vpop.permute.xlu2 %425 }
 0x254   : > { %v503_v30 = vmul.f32 %v426_v29, %v965_v7 }
 0x256   : > { %519 = vst [vmem:[%s1041_s7 + $0x18] sm:$0xff] %v503_v30 }
 0x25b   : > { %v420_v31 = vpop.permute.xlu0 %419 }
 0x25c   : > { %v502_v32 = vmul.f32 %v420_v31, %v944_v2  ;;  %v408_v4 = vpop.permute.xlu1 %407 }
 0x25d   : > { %v500_v35 = vmul.f32 %v408_v4, %v941_v1 }
 0x25e   : > { %518 = vst [vmem:[%s1041_s7 + $0x10] sm:$0xff] %v502_v32 }
 0x25f   : > { %516 = vst [vmem:[%s1041_s7] sm:$0xff] %v500_v35 }
 0x263   : > { %v438_v36 = vpop.permute.xlu2 %437 }
 0x264   : > { %v505_v37 = vmul.f32 %v438_v36, %v974_v9 }
 0x266   : > { %521 = vst [vmem:[%s1041_s7 + $0x28] sm:$0xff] %v505_v37 }
 0x26b   : > { %v463_v38 = vpop.permute.xlu0 %462 }
 0x26c   : > { %v509_v7 = vmul.f32 %v463_v38, %v950_v3  ;;  %v432_v39 = vpop.permute.xlu1 %431 }
 0x26d   : > { %v504_v40 = vmul.f32 %v432_v39, %v968_v8 }
 0x26e   : > { %525 = vst [vmem:[%s1041_s7 + $0x48] sm:$0xff] %v509_v7 }
 0x26f   : > { %520 = vst [vmem:[%s1041_s7 + $0x20] sm:$0xff] %v504_v40 }
 0x273   : > { %v450_v2 = vpop.permute.xlu2 %449 }
 0x274   : > { %v507_v1 = vmul.f32 %v450_v2, %v992_v14 }
 0x276   : > { %523 = vst [vmem:[%s1041_s7 + $0x38] sm:$0xff] %v507_v1 }
 0x27b   : > { %v493_v41 = vpop.permute.xlu0 %492 }
 0x27c   : > { %v514_v9 = vmul.f32 %v493_v41, %v986_v12  ;;  %v444_v42 = vpop.permute.xlu1 %443 }
 0x27d   : > { %v506_v43 = vmul.f32 %v444_v42, %v989_v13 }
 0x27e   : > { %530 = vst [vmem:[%s1041_s7 + $0x70] sm:$0xff] %v514_v9 }
 0x27f   : > { %522 = vst [vmem:[%s1041_s7 + $0x30] sm:$0xff] %v506_v43 }
 0x283   : > { %v469_v3 = vpop.permute.xlu2 %468 }
 0x284   : > { %v510_v8 = vmul.f32 %v469_v3, %v956_v5 }
 0x286   : > { %526 = vst [vmem:[%s1041_s7 + $0x50] sm:$0xff] %v510_v8 }
 0x28c   : > { %v457_v34 = vpop.permute.xlu1 %456 }
 0x28d   : > { %v508_v14 = vmul.f32 %v457_v34, %v938_v0 }
 0x28f   : > { %524 = vst [vmem:[%s1041_s7 + $0x40] sm:$0xff] %v508_v14 }
 0x293   : > { %v481_v44 = vpop.permute.xlu2 %480 }
 0x294   : > { %v512_v12 = vmul.f32 %v481_v44, %v977_v10 }
 0x296   : > { %528 = vst [vmem:[%s1041_s7 + $0x60] sm:$0xff] %v512_v12 }
 0x29c   : > { %v475_v13 = vpop.permute.xlu1 %474 }
 0x29d   : > { %v511_v45 = vmul.f32 %v475_v13, %v962_v6 }
 0x29f   : > { %527 = vst [vmem:[%s1041_s7 + $0x58] sm:$0xff] %v511_v45 }
 0x2a3   : > { %v499_v46 = vpop.permute.xlu2 %498 }
 0x2a4   : > { %v515_v5 = vmul.f32 %v499_v46, %v998_v15 }
 0x2a6   : > { %531 = vst [vmem:[%s1041_s7 + $0x78] sm:$0xff] %v515_v5 }
 0x2ac   : > { %v487_v0 = vpop.permute.xlu1 %486 }
 0x2ad   : > { %v513_v10 = vmul.f32 %v487_v0, %v980_v11 }
 0x2af   : > { %529 = vst [vmem:[%s1041_s7 + $0x68] sm:$0xff] %v513_v10 }
 0x2b0   : > { %774 = shalt.err (!%p771_p4)
}
 0x2b1   : > { %s817_s29 = smov 128   ;;  %s818_s6 = smov 8  }
 0x2b2   : > { %648 = dma.vmem_to_hbm [thread:$0]  (%p889_p11), %s547_s11, 2048, %s549_s17, %s533_s19, %s817_s29, %s817_s29, %s818_s6  }
 0x2b3 PF: > { %s563_s23 = sand.u32 1, %s801_s12   ;;  %p1117_p7 = scmp.ge.s32.totalorder %s813_s15, 2 }
 0x2b4   : > { %s564_s5 = scalar_lea.sflag [#allocation4], %s563_s23 }
 0x2b5   : > { %p655_p5 = pnand %p1117_p7, %p893_p12 }
 0x2b7   : > { %p656_p8 = pneg %p655_p5 }
 0x2b9   : > { %796 = dma.done.wait (%p656_p8), %s564_s5, 2048  }
 0x2ba   : > { %798 = vsyncadd (%p656_p8), %s564_s5, 4294965248  ;;  %p16_p10 = scmp.ge.s32.totalorder %s864_s18, 4   ;;  %s1118_s12 = smov %s805_s13 }
 0x2bb   : > { %s1119_s13 = smov %s809_s14  ;;  %s1120_s14 = smov %s876_s21 }
 0x2bc   : > { %s1121_s15 = smov %s864_s18  ;;  %18 = sbr.rel (!%p16_p10) target bundleno = 5 (0x5), region = 77 }
 0x2c1   :  { %570 = vsyncpa [#allocation3], 1 }
 0x2c2   :  { %572 = vsyncpa [#allocation3 + $0x1], 1 }
 0x2c3   :  { %573 = vsyncpa [#allocation4], 1 }
 0x2c4   :  { %575 = vsyncpa [#allocation4 + $0x1], 1 }

</bundles_post_ra>
